<compile_context>
chip_gen: v5e
topology: v5e:2x2
jax: 0.10.0
libtpu: 0.0.40
codegen_flags: <defaults>
</compile_context>

<pallas_src>
import functools

import jax
import jax.numpy as jnp
from jax import lax
from jax.experimental import pallas as pl
from jax.experimental.pallas import tpu as pltpu

EPS = 1e-5


def _round_up(n, m):
    return -(-n // m) * m


# ---------------------------------------------------------------------------
# Kernel
# ---------------------------------------------------------------------------
def multitask_kernel(x_ref, w_ref, v_ref, out_ref, stats_ref, *,
                     F, fp, B, TB, need_mask):
    # w_ref: bf16 (fp+256, 128) packed weight slab
    #   rows [0, fp)          : W1  (F -> 128), rows F..fp-1 are zero pad
    #   rows [fp, fp+128)     : W2  (128 -> 64), zero-padded to 128 cols
    #   rows [fp+128, fp+192) : Wh1 fused head layer 1 (64 -> 64), padded cols
    #   rows [fp+192, fp+256) : Wh2 block-diag head layer 2 (64 -> 2), padded
    # v_ref: f32 (8, 128) vector slab
    #   row 0: b1, 1: gamma1, 2: beta1, 3: b2, 4: gamma2, 5: beta2,
    #   row 6: head-1 bias (bs1|ba1), 7: head-2 bias (bs2|ba2)
    # stats_ref: f32 (8, 128) persistent VMEM scratch
    #   row 0: sum(h1), 1: sum(h1^2), 2: sum(h2), 3: sum(h2^2),
    #   row 4: BN1 scale, 5: BN1 shift, 6: BN2 scale, 7: BN2 shift
    p = pl.program_id(0)          # pass index (0: BN1 stats, 1: BN2 stats, 2: heads)
    i = pl.program_id(1)          # batch-tile index

    inv_b = 1.0 / float(B)

    def row_mask():
        rows = i * TB + lax.broadcasted_iota(jnp.int32, (TB, 1), 0)
        return (rows < B).astype(jnp.float32)

    def layer1():
        x = x_ref[...]
        if x.dtype != jnp.bfloat16:
            x = x.astype(jnp.bfloat16)
        h = jnp.dot(x, w_ref[0:F, :], preferred_element_type=jnp.float32)
        h = h + v_ref[0:1, :]
        return jnp.maximum(h, 0.0)                       # pre-BN1, (TB, 128)

    def layer2(h1):
        # apply folded BN1 (scale/shift computed in pass 1, i == 0)
        h1 = h1 * stats_ref[4:5, :] + stats_ref[5:6, :]
        h = jnp.dot(h1.astype(jnp.bfloat16), w_ref[fp:fp + 128, :],
                    preferred_element_type=jnp.float32)
        h = h + v_ref[3:4, :]
        return jnp.maximum(h, 0.0)                       # pre-BN2, pad cols = 0

    def accumulate(h, sum_row, sq_row):
        if need_mask:
            h = h * row_mask()                           # drop padded rows
        stats_ref[sum_row:sum_row + 1, :] += jnp.sum(h, axis=0, keepdims=True)
        stats_ref[sq_row:sq_row + 1, :] += jnp.sum(h * h, axis=0, keepdims=True)

    def finalize_bn(sum_row, sq_row, gamma, beta, scale_row, shift_row):
        mu = stats_ref[sum_row:sum_row + 1, :] * inv_b
        var = stats_ref[sq_row:sq_row + 1, :] * inv_b - mu * mu
        var = jnp.maximum(var, 0.0)                      # guard E[h^2]-mu^2 < 0
        scale = gamma * lax.rsqrt(var + EPS)
        stats_ref[scale_row:scale_row + 1, :] = scale
        stats_ref[shift_row:shift_row + 1, :] = beta - mu * scale

    # ---- pass 0: BN1 batch statistics ----
    @pl.when(p == 0)
    def _pass0():
        @pl.when(i == 0)
        def _():
            stats_ref[...] = jnp.zeros_like(stats_ref)
        accumulate(layer1(), 0, 1)

    # ---- pass 1: fold BN1, BN2 batch statistics ----
    @pl.when(p == 1)
    def _pass1():
        @pl.when(i == 0)
        def _():
            finalize_bn(0, 1, v_ref[1:2, :], v_ref[2:3, :], 4, 5)
        accumulate(layer2(layer1()), 2, 3)

    # ---- pass 2: fold BN2, fused heads, sigmoid, store ----
    @pl.when(p == 2)
    def _pass2():
        @pl.when(i == 0)
        def _():
            finalize_bn(2, 3, v_ref[4:5, :], v_ref[5:6, :], 6, 7)
        h2 = layer2(layer1())
        h2 = h2 * stats_ref[6:7, :] + stats_ref[7:8, :]
        # fused heads: one (->64) matmul + ReLU, one block-diag (->2), K=64
        s = jnp.dot(h2[:, 0:64].astype(jnp.bfloat16),
                    w_ref[fp + 128:fp + 192, :],
                    preferred_element_type=jnp.float32) + v_ref[6:7, :]
        s = jnp.maximum(s, 0.0)
        z = jnp.dot(s[:, 0:64].astype(jnp.bfloat16),
                    w_ref[fp + 192:fp + 256, :],
                    preferred_element_type=jnp.float32) + v_ref[7:8, :]
        # torch.cat([sigmoid(sex), sigmoid(adhd)], dim=1) -- single store
        out_ref[...] = jax.nn.sigmoid(z[:, 0:2])


# ---------------------------------------------------------------------------
# Parameter construction / packing (host side, done once)
# ---------------------------------------------------------------------------
def init_params(key, input_dim):
    """PyTorch-default init. Linear weights stored transposed as (in, out)."""
    def linear(k, fan_in, fan_out):
        kw, kb = jax.random.split(k)
        bound = 1.0 / jnp.sqrt(float(fan_in))
        w = jax.random.uniform(kw, (fan_in, fan_out), jnp.float32, -bound, bound)
        b = jax.random.uniform(kb, (1, fan_out), jnp.float32, -bound, bound)
        return w, b

    keys = jax.random.split(key, 6)
    w1, b1 = linear(keys[0], input_dim, 128)
    w2, b2 = linear(keys[1], 128, 64)
    ws1, bs1 = linear(keys[2], 64, 32)
    ws2, bs2 = linear(keys[3], 32, 1)
    wa1, ba1 = linear(keys[4], 64, 32)
    wa2, ba2 = linear(keys[5], 32, 1)

    g1 = jnp.ones((1, 128), jnp.float32)
    be1 = jnp.zeros((1, 128), jnp.float32)
    g2 = jnp.ones((1, 64), jnp.float32)
    be2 = jnp.zeros((1, 64), jnp.float32)

    return (w1, b1, g1, be1, w2, b2, g2, be2,
            ws1, bs1, ws2, bs2, wa1, ba1, wa2, ba2)


def pack_params(params, input_dim):
    """Pack 16 parameter arrays into one bf16 weight slab + one f32 (8,128) slab."""
    (w1, b1, g1, be1, w2, b2, g2, be2,
     ws1, bs1, ws2, bs2, wa1, ba1, wa2, ba2) = params

    fp = _round_up(input_dim, 16)    # keep slab region boundaries 16-aligned (bf16)

    def pad_rc(w, rows, cols=128):
        return jnp.pad(w, ((0, rows - w.shape[0]), (0, cols - w.shape[1])))

    # Fused head layer 1: (64, 64) = [ws1 | wa1]
    wh1 = jnp.concatenate([ws1, wa1], axis=1)
    # Fused head layer 2: block-diagonal (64, 2) = [[ws2, 0], [0, wa2]]
    wh2 = jnp.zeros((64, 2), jnp.float32)
    wh2 = wh2.at[0:32, 0:1].set(ws2)
    wh2 = wh2.at[32:64, 1:2].set(wa2)

    wslab = jnp.concatenate(
        [pad_rc(w1, fp), pad_rc(w2, 128), pad_rc(wh1, 64), pad_rc(wh2, 64)],
        axis=0).astype(jnp.bfloat16)                     # (fp + 256, 128) bf16

    def pad_row(v):
        v = v.reshape(1, -1)
        return jnp.pad(v, ((0, 0), (0, 128 - v.shape[1])))

    bh1 = jnp.concatenate([bs1, ba1], axis=1)            # (1, 64)
    bh2 = jnp.concatenate([bs2, ba2], axis=1)            # (1, 2)
    vec = jnp.concatenate(
        [pad_row(b1), pad_row(g1), pad_row(be1),
         pad_row(b2), pad_row(g2), pad_row(be2),
         pad_row(bh1), pad_row(bh2)], axis=0)            # (8, 128) f32

    return wslab, vec, fp


# ---------------------------------------------------------------------------
# Wrapper
# ---------------------------------------------------------------------------
def multitask_forward(x, wslab, vec, input_dim, fp, *, tb_cap=256):
    B, F = x.shape
    assert F == input_dim

    # Batch tile: big enough to fill the MXU M-dim at large B, small enough
    # that the live VMEM footprint fits every generation (incl. v7x's 64 MiB).
    TB = min(_round_up(B, 8), tb_cap)
    Bp = _round_up(B, TB)
    if Bp != B:
        # TODO(synk): pre-pad the batch outside the hot loop to avoid this op.
        x = jnp.pad(x, ((0, Bp - B), (0, 0)))
    nb = Bp // TB
    need_mask = (Bp != B)

    kernel = functools.partial(multitask_kernel, F=F, fp=fp, B=B, TB=TB,
                               need_mask=need_mask)

    # Explicit scoped-VMEM budget: double-buffered x tile + resident slabs +
    # a handful of (TB, 128) f32 intermediates, with 4x headroom.
    x_bytes = TB * F * x.dtype.itemsize
    w_bytes = wslab.size * wslab.dtype.itemsize
    live = 2 * x_bytes + 2 * w_bytes + vec.size * 4 + 6 * TB * 128 * 4
    vmem_limit = int(min(48 << 20, max(8 << 20, 4 * live)))

    # Trunk is recomputed each pass -> 3x Lin1, 2x Lin2, 1x heads.
    flops = 2 * Bp * (3 * F * 128 + 2 * 128 * 64 + 64 * 64 + 64 * 2)
    bytes_accessed = (3 * Bp * F * x.dtype.itemsize + w_bytes
                      + vec.size * 4 + Bp * 2 * 4)

    out = pl.pallas_call(
        kernel,
        out_shape=jax.ShapeDtypeStruct((Bp, 2), jnp.float32),
        grid_spec=pltpu.PrefetchScalarGridSpec(
            num_scalar_prefetch=0,
            grid=(3, nb),                                  # (pass, batch tile)
            in_specs=[
                pl.BlockSpec((TB, F), lambda p, i: (i, 0)),        # x tile
                pl.BlockSpec(wslab.shape, lambda p, i: (0, 0)),    # weights, resident
                pl.BlockSpec(vec.shape, lambda p, i: (0, 0)),      # vectors, resident
            ],
            out_specs=pl.BlockSpec((TB, 2), lambda p, i: (i, 0)),
            scratch_shapes=[pltpu.VMEM((8, 128), jnp.float32)],    # BN stats/scales
        ),
        compiler_params=pltpu.CompilerParams(
            dimension_semantics=("arbitrary", "arbitrary"),
            vmem_limit_bytes=vmem_limit),
        cost_estimate=pl.CostEstimate(
            flops=flops, transcendentals=8 * Bp, bytes_accessed=bytes_accessed),
    )(x, wslab, vec)

    return out[:B] if Bp != B else out


# ---------------------------------------------------------------------------
# Pure-JAX reference (training-mode BN, f32) for a sanity check
# ---------------------------------------------------------------------------
def reference_forward(x, params):
    (w1, b1, g1, be1, w2, b2, g2, be2,
     ws1, bs1, ws2, bs2, wa1, ba1, wa2, ba2) = params

    def bn(h, g, b):
        mu = jnp.mean(h, axis=0, keepdims=True)
        var = jnp.mean((h - mu) ** 2, axis=0, keepdims=True)
        return (h - mu) / jnp.sqrt(var + EPS) * g + b

    h = jnp.maximum(x @ w1 + b1, 0.0)
    h = bn(h, g1, be1)
    h = jnp.maximum(h @ w2 + b2, 0.0)
    h = bn(h, g2, be2)
    sex = jax.nn.sigmoid(jnp.maximum(h @ ws1 + bs1, 0.0) @ ws2 + bs2)
    adhd = jax.nn.sigmoid(jnp.maximum(h @ wa1 + ba1, 0.0) @ wa2 + ba2)
    return jnp.concatenate([sex, adhd], axis=1)


if __name__ == "__main__":
    key = jax.random.PRNGKey(0)
    k_param, k_x = jax.random.split(key)

    B, INPUT_DIM = 16, 32
    raw_params = init_params(k_param, INPUT_DIM)
    wslab, vec, fp = pack_params(raw_params, INPUT_DIM)
    x = jax.random.normal(k_x, (B, INPUT_DIM), jnp.float32)

    out = multitask_forward(x, wslab, vec, INPUT_DIM, fp)
    out = jax.block_until_ready(out)

    assert out.shape == (B, 2)
    assert bool(jnp.all(jnp.isfinite(out)))
    assert bool(jnp.all((out >= 0.0) & (out <= 1.0)))   # sigmoid outputs

    ref = reference_forward(x, raw_params)
    max_err = float(jnp.max(jnp.abs(out - ref)))
    assert max_err < 5e-2, f"mismatch vs reference: {max_err}"  # bf16 MXU tol

    print("KERNEL_OK")
</pallas_src>

<mosaic_0001>
module attributes {stable_mosaic.version = 11 : i64} {
  func.func @multitask_kernel(%arg0: i32, %arg1: i32, %arg2: memref<16x32xf32, #tpu.memory_space<vmem>>, %arg3: memref<288x128xbf16, #tpu.memory_space<vmem>>, %arg4: memref<8x128xf32, #tpu.memory_space<vmem>>, %arg5: memref<16x2xf32, #tpu.memory_space<vmem>>, %arg6: memref<8x128xf32, #tpu.memory_space<vmem>>) attributes {dimension_semantics = [#tpu.dimension_semantics<arbitrary>, #tpu.dimension_semantics<arbitrary>], iteration_bounds = array<i64: 3, 1>, scalar_prefetch = 0 : i64, scratch_operands = 1 : i64, tpu.core_type = #tpu.core_type<tc>, window_params = [{transform_indices = @transform_0, window_bounds = array<i64: 16, 32>}, {pipeline_mode = #tpu.pipeline_mode<synchronous>, transform_indices = @transform_1, window_bounds = array<i64: 288, 128>}, {pipeline_mode = #tpu.pipeline_mode<synchronous>, transform_indices = @transform_2, window_bounds = array<i64: 8, 128>}, {transform_indices = @transform_3, window_bounds = array<i64: 16, 2>}]} {
    %c0_i32 = arith.constant 0 : i32
    %0 = arith.cmpi eq, %arg0, %c0_i32 : i32
    %1 = arith.extui %0 : i1 to i32
    %c0_i32_0 = arith.constant 0 : i32
    %2 = arith.cmpi ne, %1, %c0_i32_0 : i32
    scf.if %2 {
      %c0_i32_3 = arith.constant 0 : i32
      %9 = arith.cmpi eq, %arg1, %c0_i32_3 : i32
      %10 = arith.extui %9 : i1 to i32
      %c0_i32_4 = arith.constant 0 : i32
      %11 = arith.cmpi ne, %10, %c0_i32_4 : i32
      scf.if %11 {
        %cst_20 = arith.constant 0.000000e+00 : f32
        %32 = vector.broadcast %cst_20 : f32 to vector<8x128xf32>
        %c0_21 = arith.constant 0 : index
        %c0_22 = arith.constant 0 : index
        %33 = vector.load %arg6[%c0_21, %c0_22] : memref<8x128xf32, #tpu.memory_space<vmem>>, vector<8x128xf32>
        tpu.vector_store %arg6[%c0_21, %c0_22], %32 {strides = array<i32>} : memref<8x128xf32, #tpu.memory_space<vmem>>, vector<8x128xf32>,
      } else {
      }
      %c0 = arith.constant 0 : index
      %c0_5 = arith.constant 0 : index
      %12 = vector.load %arg2[%c0, %c0_5] : memref<16x32xf32, #tpu.memory_space<vmem>>, vector<16x32xf32>
      %13 = arith.truncf %12 : vector<16x32xf32> to vector<16x32xbf16>
      %c0_6 = arith.constant 0 : index
      %c0_7 = arith.constant 0 : index
      %14 = vector.load %arg3[%c0_6, %c0_7] : memref<288x128xbf16, #tpu.memory_space<vmem>>, vector<32x128xbf16>
      %cst = arith.constant dense<0.000000e+00> : vector<16x128xf32>
      %15 = tpu.matmul %13, %14, %cst {dimension_numbers = #tpu.dot_dimension_numbers<[1], [0], [0], [1], [0, 0, 1, 1], [], []>} : vector<16x32xbf16>, vector<32x128xbf16>, vector<16x128xf32> -> vector<16x128xf32>
      %c0_8 = arith.constant 0 : index
      %c0_9 = arith.constant 0 : index
      %16 = vector.load %arg4[%c0_8, %c0_9] : memref<8x128xf32, #tpu.memory_space<vmem>>, vector<1x128xf32>
      %17 = vector.broadcast %16 : vector<1x128xf32> to vector<16x128xf32>
      %18 = arith.addf %15, %17 : vector<16x128xf32>
      %cst_10 = arith.constant 0.000000e+00 : f32
      %19 = vector.broadcast %cst_10 : f32 to vector<16x128xf32>
      %20 = arith.maximumf %18, %19 : vector<16x128xf32>
      %c0_11 = arith.constant 0 : index
      %c0_12 = arith.constant 0 : index
      %21 = vector.load %arg6[%c0_11, %c0_12] : memref<8x128xf32, #tpu.memory_space<vmem>>, vector<1x128xf32>
      %cst_13 = arith.constant dense<0.000000e+00> : vector<128xf32>
      %22 = vector.multi_reduction <add>, %20, %cst_13 [0] : vector<16x128xf32> to vector<128xf32>
      %23 = vector.shape_cast %22 : vector<128xf32> to vector<1x128xf32>
      %24 = arith.addf %21, %23 : vector<1x128xf32>
      %c0_14 = arith.constant 0 : index
      %c0_15 = arith.constant 0 : index
      %25 = vector.load %arg6[%c0_14, %c0_15] : memref<8x128xf32, #tpu.memory_space<vmem>>, vector<1x128xf32>
      tpu.vector_store %arg6[%c0_14, %c0_15], %24 {strides = array<i32>} : memref<8x128xf32, #tpu.memory_space<vmem>>, vector<1x128xf32>,
      %c1 = arith.constant 1 : index
      %c0_16 = arith.constant 0 : index
      %26 = vector.load %arg6[%c1, %c0_16] : memref<8x128xf32, #tpu.memory_space<vmem>>, vector<1x128xf32>
      %27 = arith.mulf %20, %20 : vector<16x128xf32>
      %cst_17 = arith.constant dense<0.000000e+00> : vector<128xf32>
      %28 = vector.multi_reduction <add>, %27, %cst_17 [0] : vector<16x128xf32> to vector<128xf32>
      %29 = vector.shape_cast %28 : vector<128xf32> to vector<1x128xf32>
      %30 = arith.addf %26, %29 : vector<1x128xf32>
      %c1_18 = arith.constant 1 : index
      %c0_19 = arith.constant 0 : index
      %31 = vector.load %arg6[%c1_18, %c0_19] : memref<8x128xf32, #tpu.memory_space<vmem>>, vector<1x128xf32>
      tpu.vector_store %arg6[%c1_18, %c0_19], %30 {strides = array<i32>} : memref<8x128xf32, #tpu.memory_space<vmem>>, vector<1x128xf32>,
    } else {
    }
    %c1_i32 = arith.constant 1 : i32
    %3 = arith.cmpi eq, %arg0, %c1_i32 : i32
    %4 = arith.extui %3 : i1 to i32
    %c0_i32_1 = arith.constant 0 : i32
    %5 = arith.cmpi ne, %4, %c0_i32_1 : i32
    scf.if %5 {
      %c0_i32_3 = arith.constant 0 : i32
      %9 = arith.cmpi eq, %arg1, %c0_i32_3 : i32
      %10 = arith.extui %9 : i1 to i32
      %c0_i32_4 = arith.constant 0 : i32
      %11 = arith.cmpi ne, %10, %c0_i32_4 : i32
      scf.if %11 {
        %c1 = arith.constant 1 : index
        %c0_26 = arith.constant 0 : index
        %46 = vector.load %arg4[%c1, %c0_26] : memref<8x128xf32, #tpu.memory_space<vmem>>, vector<1x128xf32>
        %c2_27 = arith.constant 2 : index
        %c0_28 = arith.constant 0 : index
        %47 = vector.load %arg4[%c2_27, %c0_28] : memref<8x128xf32, #tpu.memory_space<vmem>>, vector<1x128xf32>
        %c0_29 = arith.constant 0 : index
        %c0_30 = arith.constant 0 : index
        %48 = vector.load %arg6[%c0_29, %c0_30] : memref<8x128xf32, #tpu.memory_space<vmem>>, vector<1x128xf32>
        %cst_31 = arith.constant 6.250000e-02 : f32
        %49 = vector.broadcast %cst_31 : f32 to vector<1x128xf32>
        %50 = arith.mulf %48, %49 : vector<1x128xf32>
        %c1_32 = arith.constant 1 : index
        %c0_33 = arith.constant 0 : index
        %51 = vector.load %arg6[%c1_32, %c0_33] : memref<8x128xf32, #tpu.memory_space<vmem>>, vector<1x128xf32>
        %cst_34 = arith.constant 6.250000e-02 : f32
        %52 = vector.broadcast %cst_34 : f32 to vector<1x128xf32>
        %53 = arith.mulf %51, %52 : vector<1x128xf32>
        %54 = arith.mulf %50, %50 : vector<1x128xf32>
        %55 = arith.subf %53, %54 : vector<1x128xf32>
        %cst_35 = arith.constant 0.000000e+00 : f32
        %56 = vector.broadcast %cst_35 : f32 to vector<1x128xf32>
        %57 = arith.maximumf %55, %56 : vector<1x128xf32>
        %cst_36 = arith.constant 9.99999974E-6 : f32
        %58 = vector.broadcast %cst_36 : f32 to vector<1x128xf32>
        %59 = arith.addf %57, %58 : vector<1x128xf32>
        %60 = math.rsqrt %59 : vector<1x128xf32>
        %61 = arith.mulf %46, %60 : vector<1x128xf32>
        %c4_37 = arith.constant 4 : index
        %c0_38 = arith.constant 0 : index
        %62 = vector.load %arg6[%c4_37, %c0_38] : memref<8x128xf32, #tpu.memory_space<vmem>>, vector<1x128xf32>
        tpu.vector_store %arg6[%c4_37, %c0_38], %61 {strides = array<i32>} : memref<8x128xf32, #tpu.memory_space<vmem>>, vector<1x128xf32>,
        %63 = arith.mulf %50, %61 : vector<1x128xf32>
        %64 = arith.subf %47, %63 : vector<1x128xf32>
        %c5_39 = arith.constant 5 : index
        %c0_40 = arith.constant 0 : index
        %65 = vector.load %arg6[%c5_39, %c0_40] : memref<8x128xf32, #tpu.memory_space<vmem>>, vector<1x128xf32>
        tpu.vector_store %arg6[%c5_39, %c0_40], %64 {strides = array<i32>} : memref<8x128xf32, #tpu.memory_space<vmem>>, vector<1x128xf32>,
      } else {
      }
      %c0 = arith.constant 0 : index
      %c0_5 = arith.constant 0 : index
      %12 = vector.load %arg2[%c0, %c0_5] : memref<16x32xf32, #tpu.memory_space<vmem>>, vector<16x32xf32>
      %13 = arith.truncf %12 : vector<16x32xf32> to vector<16x32xbf16>
      %c0_6 = arith.constant 0 : index
      %c0_7 = arith.constant 0 : index
      %14 = vector.load %arg3[%c0_6, %c0_7] : memref<288x128xbf16, #tpu.memory_space<vmem>>, vector<32x128xbf16>
      %cst = arith.constant dense<0.000000e+00> : vector<16x128xf32>
      %15 = tpu.matmul %13, %14, %cst {dimension_numbers = #tpu.dot_dimension_numbers<[1], [0], [0], [1], [0, 0, 1, 1], [], []>} : vector<16x32xbf16>, vector<32x128xbf16>, vector<16x128xf32> -> vector<16x128xf32>
      %c0_8 = arith.constant 0 : index
      %c0_9 = arith.constant 0 : index
      %16 = vector.load %arg4[%c0_8, %c0_9] : memref<8x128xf32, #tpu.memory_space<vmem>>, vector<1x128xf32>
      %17 = vector.broadcast %16 : vector<1x128xf32> to vector<16x128xf32>
      %18 = arith.addf %15, %17 : vector<16x128xf32>
      %cst_10 = arith.constant 0.000000e+00 : f32
      %19 = vector.broadcast %cst_10 : f32 to vector<16x128xf32>
      %20 = arith.maximumf %18, %19 : vector<16x128xf32>
      %c4 = arith.constant 4 : index
      %c0_11 = arith.constant 0 : index
      %21 = vector.load %arg6[%c4, %c0_11] : memref<8x128xf32, #tpu.memory_space<vmem>>, vector<1x128xf32>
      %22 = vector.broadcast %21 : vector<1x128xf32> to vector<16x128xf32>
      %23 = arith.mulf %20, %22 : vector<16x128xf32>
      %c5 = arith.constant 5 : index
      %c0_12 = arith.constant 0 : index
      %24 = vector.load %arg6[%c5, %c0_12] : memref<8x128xf32, #tpu.memory_space<vmem>>, vector<1x128xf32>
      %25 = vector.broadcast %24 : vector<1x128xf32> to vector<16x128xf32>
      %26 = arith.addf %23, %25 : vector<16x128xf32>
      %27 = arith.truncf %26 : vector<16x128xf32> to vector<16x128xbf16>
      %c32 = arith.constant 32 : index
      %c0_13 = arith.constant 0 : index
      %28 = vector.load %arg3[%c32, %c0_13] : memref<288x128xbf16, #tpu.memory_space<vmem>>, vector<128x128xbf16>
      %cst_14 = arith.constant dense<0.000000e+00> : vector<16x128xf32>
      %29 = tpu.matmul %27, %28, %cst_14 {dimension_numbers = #tpu.dot_dimension_numbers<[1], [0], [0], [1], [0, 0, 1, 1], [], []>} : vector<16x128xbf16>, vector<128x128xbf16>, vector<16x128xf32> -> vector<16x128xf32>
      %c3 = arith.constant 3 : index
      %c0_15 = arith.constant 0 : index
      %30 = vector.load %arg4[%c3, %c0_15] : memref<8x128xf32, #tpu.memory_space<vmem>>, vector<1x128xf32>
      %31 = vector.broadcast %30 : vector<1x128xf32> to vector<16x128xf32>
      %32 = arith.addf %29, %31 : vector<16x128xf32>
      %cst_16 = arith.constant 0.000000e+00 : f32
      %33 = vector.broadcast %cst_16 : f32 to vector<16x128xf32>
      %34 = arith.maximumf %32, %33 : vector<16x128xf32>
      %c2 = arith.constant 2 : index
      %c0_17 = arith.constant 0 : index
      %35 = vector.load %arg6[%c2, %c0_17] : memref<8x128xf32, #tpu.memory_space<vmem>>, vector<1x128xf32>
      %cst_18 = arith.constant dense<0.000000e+00> : vector<128xf32>
      %36 = vector.multi_reduction <add>, %34, %cst_18 [0] : vector<16x128xf32> to vector<128xf32>
      %37 = vector.shape_cast %36 : vector<128xf32> to vector<1x128xf32>
      %38 = arith.addf %35, %37 : vector<1x128xf32>
      %c2_19 = arith.constant 2 : index
      %c0_20 = arith.constant 0 : index
      %39 = vector.load %arg6[%c2_19, %c0_20] : memref<8x128xf32, #tpu.memory_space<vmem>>, vector<1x128xf32>
      tpu.vector_store %arg6[%c2_19, %c0_20], %38 {strides = array<i32>} : memref<8x128xf32, #tpu.memory_space<vmem>>, vector<1x128xf32>,
      %c3_21 = arith.constant 3 : index
      %c0_22 = arith.constant 0 : index
      %40 = vector.load %arg6[%c3_21, %c0_22] : memref<8x128xf32, #tpu.memory_space<vmem>>, vector<1x128xf32>
      %41 = arith.mulf %34, %34 : vector<16x128xf32>
      %cst_23 = arith.constant dense<0.000000e+00> : vector<128xf32>
      %42 = vector.multi_reduction <add>, %41, %cst_23 [0] : vector<16x128xf32> to vector<128xf32>
      %43 = vector.shape_cast %42 : vector<128xf32> to vector<1x128xf32>
      %44 = arith.addf %40, %43 : vector<1x128xf32>
      %c3_24 = arith.constant 3 : index
      %c0_25 = arith.constant 0 : index
      %45 = vector.load %arg6[%c3_24, %c0_25] : memref<8x128xf32, #tpu.memory_space<vmem>>, vector<1x128xf32>
      tpu.vector_store %arg6[%c3_24, %c0_25], %44 {strides = array<i32>} : memref<8x128xf32, #tpu.memory_space<vmem>>, vector<1x128xf32>,
    } else {
    }
    %c2_i32 = arith.constant 2 : i32
    %6 = arith.cmpi eq, %arg0, %c2_i32 : i32
    %7 = arith.extui %6 : i1 to i32
    %c0_i32_2 = arith.constant 0 : i32
    %8 = arith.cmpi ne, %7, %c0_i32_2 : i32
    scf.if %8 {
      %c0_i32_3 = arith.constant 0 : i32
      %9 = arith.cmpi eq, %arg1, %c0_i32_3 : i32
      %10 = arith.extui %9 : i1 to i32
      %c0_i32_4 = arith.constant 0 : i32
      %11 = arith.cmpi ne, %10, %c0_i32_4 : i32
      scf.if %11 {
        %c4_31 = arith.constant 4 : index
        %c0_32 = arith.constant 0 : index
        %64 = vector.load %arg4[%c4_31, %c0_32] : memref<8x128xf32, #tpu.memory_space<vmem>>, vector<1x128xf32>
        %c5_33 = arith.constant 5 : index
        %c0_34 = arith.constant 0 : index
        %65 = vector.load %arg4[%c5_33, %c0_34] : memref<8x128xf32, #tpu.memory_space<vmem>>, vector<1x128xf32>
        %c2 = arith.constant 2 : index
        %c0_35 = arith.constant 0 : index
        %66 = vector.load %arg6[%c2, %c0_35] : memref<8x128xf32, #tpu.memory_space<vmem>>, vector<1x128xf32>
        %cst_36 = arith.constant 6.250000e-02 : f32
        %67 = vector.broadcast %cst_36 : f32 to vector<1x128xf32>
        %68 = arith.mulf %66, %67 : vector<1x128xf32>
        %c3_37 = arith.constant 3 : index
        %c0_38 = arith.constant 0 : index
        %69 = vector.load %arg6[%c3_37, %c0_38] : memref<8x128xf32, #tpu.memory_space<vmem>>, vector<1x128xf32>
        %cst_39 = arith.constant 6.250000e-02 : f32
        %70 = vector.broadcast %cst_39 : f32 to vector<1x128xf32>
        %71 = arith.mulf %69, %70 : vector<1x128xf32>
        %72 = arith.mulf %68, %68 : vector<1x128xf32>
        %73 = arith.subf %71, %72 : vector<1x128xf32>
        %cst_40 = arith.constant 0.000000e+00 : f32
        %74 = vector.broadcast %cst_40 : f32 to vector<1x128xf32>
        %75 = arith.maximumf %73, %74 : vector<1x128xf32>
        %cst_41 = arith.constant 9.99999974E-6 : f32
        %76 = vector.broadcast %cst_41 : f32 to vector<1x128xf32>
        %77 = arith.addf %75, %76 : vector<1x128xf32>
        %78 = math.rsqrt %77 : vector<1x128xf32>
        %79 = arith.mulf %64, %78 : vector<1x128xf32>
        %c6_42 = arith.constant 6 : index
        %c0_43 = arith.constant 0 : index
        %80 = vector.load %arg6[%c6_42, %c0_43] : memref<8x128xf32, #tpu.memory_space<vmem>>, vector<1x128xf32>
        tpu.vector_store %arg6[%c6_42, %c0_43], %79 {strides = array<i32>} : memref<8x128xf32, #tpu.memory_space<vmem>>, vector<1x128xf32>,
        %81 = arith.mulf %68, %79 : vector<1x128xf32>
        %82 = arith.subf %65, %81 : vector<1x128xf32>
        %c7_44 = arith.constant 7 : index
        %c0_45 = arith.constant 0 : index
        %83 = vector.load %arg6[%c7_44, %c0_45] : memref<8x128xf32, #tpu.memory_space<vmem>>, vector<1x128xf32>
        tpu.vector_store %arg6[%c7_44, %c0_45], %82 {strides = array<i32>} : memref<8x128xf32, #tpu.memory_space<vmem>>, vector<1x128xf32>,
      } else {
      }
      %c0 = arith.constant 0 : index
      %c0_5 = arith.constant 0 : index
      %12 = vector.load %arg2[%c0, %c0_5] : memref<16x32xf32, #tpu.memory_space<vmem>>, vector<16x32xf32>
      %13 = arith.truncf %12 : vector<16x32xf32> to vector<16x32xbf16>
      %c0_6 = arith.constant 0 : index
      %c0_7 = arith.constant 0 : index
      %14 = vector.load %arg3[%c0_6, %c0_7] : memref<288x128xbf16, #tpu.memory_space<vmem>>, vector<32x128xbf16>
      %cst = arith.constant dense<0.000000e+00> : vector<16x128xf32>
      %15 = tpu.matmul %13, %14, %cst {dimension_numbers = #tpu.dot_dimension_numbers<[1], [0], [0], [1], [0, 0, 1, 1], [], []>} : vector<16x32xbf16>, vector<32x128xbf16>, vector<16x128xf32> -> vector<16x128xf32>
      %c0_8 = arith.constant 0 : index
      %c0_9 = arith.constant 0 : index
      %16 = vector.load %arg4[%c0_8, %c0_9] : memref<8x128xf32, #tpu.memory_space<vmem>>, vector<1x128xf32>
      %17 = vector.broadcast %16 : vector<1x128xf32> to vector<16x128xf32>
      %18 = arith.addf %15, %17 : vector<16x128xf32>
      %cst_10 = arith.constant 0.000000e+00 : f32
      %19 = vector.broadcast %cst_10 : f32 to vector<16x128xf32>
      %20 = arith.maximumf %18, %19 : vector<16x128xf32>
      %c4 = arith.constant 4 : index
      %c0_11 = arith.constant 0 : index
      %21 = vector.load %arg6[%c4, %c0_11] : memref<8x128xf32, #tpu.memory_space<vmem>>, vector<1x128xf32>
      %22 = vector.broadcast %21 : vector<1x128xf32> to vector<16x128xf32>
      %23 = arith.mulf %20, %22 : vector<16x128xf32>
      %c5 = arith.constant 5 : index
      %c0_12 = arith.constant 0 : index
      %24 = vector.load %arg6[%c5, %c0_12] : memref<8x128xf32, #tpu.memory_space<vmem>>, vector<1x128xf32>
      %25 = vector.broadcast %24 : vector<1x128xf32> to vector<16x128xf32>
      %26 = arith.addf %23, %25 : vector<16x128xf32>
      %27 = arith.truncf %26 : vector<16x128xf32> to vector<16x128xbf16>
      %c32 = arith.constant 32 : index
      %c0_13 = arith.constant 0 : index
      %28 = vector.load %arg3[%c32, %c0_13] : memref<288x128xbf16, #tpu.memory_space<vmem>>, vector<128x128xbf16>
      %cst_14 = arith.constant dense<0.000000e+00> : vector<16x128xf32>
      %29 = tpu.matmul %27, %28, %cst_14 {dimension_numbers = #tpu.dot_dimension_numbers<[1], [0], [0], [1], [0, 0, 1, 1], [], []>} : vector<16x128xbf16>, vector<128x128xbf16>, vector<16x128xf32> -> vector<16x128xf32>
      %c3 = arith.constant 3 : index
      %c0_15 = arith.constant 0 : index
      %30 = vector.load %arg4[%c3, %c0_15] : memref<8x128xf32, #tpu.memory_space<vmem>>, vector<1x128xf32>
      %31 = vector.broadcast %30 : vector<1x128xf32> to vector<16x128xf32>
      %32 = arith.addf %29, %31 : vector<16x128xf32>
      %cst_16 = arith.constant 0.000000e+00 : f32
      %33 = vector.broadcast %cst_16 : f32 to vector<16x128xf32>
      %34 = arith.maximumf %32, %33 : vector<16x128xf32>
      %c6 = arith.constant 6 : index
      %c0_17 = arith.constant 0 : index
      %35 = vector.load %arg6[%c6, %c0_17] : memref<8x128xf32, #tpu.memory_space<vmem>>, vector<1x128xf32>
      %36 = vector.broadcast %35 : vector<1x128xf32> to vector<16x128xf32>
      %37 = arith.mulf %34, %36 : vector<16x128xf32>
      %c7 = arith.constant 7 : index
      %c0_18 = arith.constant 0 : index
      %38 = vector.load %arg6[%c7, %c0_18] : memref<8x128xf32, #tpu.memory_space<vmem>>, vector<1x128xf32>
      %39 = vector.broadcast %38 : vector<1x128xf32> to vector<16x128xf32>
      %40 = arith.addf %37, %39 : vector<16x128xf32>
      %41 = vector.extract_strided_slice %40 {offsets = [0, 0], sizes = [16, 64], strides = [1, 1]} : vector<16x128xf32> to vector<16x64xf32>
      %42 = arith.truncf %41 : vector<16x64xf32> to vector<16x64xbf16>
      %c160 = arith.constant 160 : index
      %c0_19 = arith.constant 0 : index
      %43 = vector.load %arg3[%c160, %c0_19] : memref<288x128xbf16, #tpu.memory_space<vmem>>, vector<64x128xbf16>
      %cst_20 = arith.constant dense<0.000000e+00> : vector<16x128xf32>
      %44 = tpu.matmul %42, %43, %cst_20 {dimension_numbers = #tpu.dot_dimension_numbers<[1], [0], [0], [1], [0, 0, 1, 1], [], []>} : vector<16x64xbf16>, vector<64x128xbf16>, vector<16x128xf32> -> vector<16x128xf32>
      %c6_21 = arith.constant 6 : index
      %c0_22 = arith.constant 0 : index
      %45 = vector.load %arg4[%c6_21, %c0_22] : memref<8x128xf32, #tpu.memory_space<vmem>>, vector<1x128xf32>
      %46 = vector.broadcast %45 : vector<1x128xf32> to vector<16x128xf32>
      %47 = arith.addf %44, %46 : vector<16x128xf32>
      %cst_23 = arith.constant 0.000000e+00 : f32
      %48 = vector.broadcast %cst_23 : f32 to vector<16x128xf32>
      %49 = arith.maximumf %47, %48 : vector<16x128xf32>
      %50 = vector.extract_strided_slice %49 {offsets = [0, 0], sizes = [16, 64], strides = [1, 1]} : vector<16x128xf32> to vector<16x64xf32>
      %51 = arith.truncf %50 : vector<16x64xf32> to vector<16x64xbf16>
      %c224 = arith.constant 224 : index
      %c0_24 = arith.constant 0 : index
      %52 = vector.load %arg3[%c224, %c0_24] : memref<288x128xbf16, #tpu.memory_space<vmem>>, vector<64x128xbf16>
      %cst_25 = arith.constant dense<0.000000e+00> : vector<16x128xf32>
      %53 = tpu.matmul %51, %52, %cst_25 {dimension_numbers = #tpu.dot_dimension_numbers<[1], [0], [0], [1], [0, 0, 1, 1], [], []>} : vector<16x64xbf16>, vector<64x128xbf16>, vector<16x128xf32> -> vector<16x128xf32>
      %c7_26 = arith.constant 7 : index
      %c0_27 = arith.constant 0 : index
      %54 = vector.load %arg4[%c7_26, %c0_27] : memref<8x128xf32, #tpu.memory_space<vmem>>, vector<1x128xf32>
      %55 = vector.broadcast %54 : vector<1x128xf32> to vector<16x128xf32>
      %56 = arith.addf %53, %55 : vector<16x128xf32>
      %57 = vector.extract_strided_slice %56 {offsets = [0, 0], sizes = [16, 2], strides = [1, 1]} : vector<16x128xf32> to vector<16x2xf32>
      %58 = arith.negf %57 : vector<16x2xf32>
      %59 = math.exp %58 : vector<16x2xf32>
      %cst_28 = arith.constant 1.000000e+00 : f32
      %60 = vector.broadcast %cst_28 : f32 to vector<16x2xf32>
      %61 = arith.addf %60, %59 : vector<16x2xf32>
      %62 = arith.divf %60, %61 : vector<16x2xf32>
      %c0_29 = arith.constant 0 : index
      %c0_30 = arith.constant 0 : index
      %63 = vector.load %arg5[%c0_29, %c0_30] : memref<16x2xf32, #tpu.memory_space<vmem>>, vector<16x2xf32>
      tpu.vector_store %arg5[%c0_29, %c0_30], %62 {strides = array<i32>} : memref<16x2xf32, #tpu.memory_space<vmem>>, vector<16x2xf32>,
    } else {
    }
    return
  }
  func.func @transform_0(%arg0: i32, %arg1: i32) -> (i32, i32) {
    %c0_i32 = arith.constant 0 : i32
    %c0_i32_0 = arith.constant 0 : i32
    return %arg1, %c0_i32 : i32, i32
  }
  func.func @transform_1(%arg0: i32, %arg1: i32) -> (i32, i32) {
    %c0_i32 = arith.constant 0 : i32
    %c0_i32_0 = arith.constant 0 : i32
    %c0_i32_1 = arith.constant 0 : i32
    return %c0_i32, %c0_i32_0 : i32, i32
  }
  func.func @transform_2(%arg0: i32, %arg1: i32) -> (i32, i32) {
    %c0_i32 = arith.constant 0 : i32
    %c0_i32_0 = arith.constant 0 : i32
    %c0_i32_1 = arith.constant 0 : i32
    return %c0_i32, %c0_i32_0 : i32, i32
  }
  func.func @transform_3(%arg0: i32, %arg1: i32) -> (i32, i32) {
    %c0_i32 = arith.constant 0 : i32
    %c0_i32_0 = arith.constant 0 : i32
    return %arg1, %c0_i32 : i32, i32
  }
}

</mosaic_0001>

<bundles_post_ra>
// kernel: tpu_custom_call.1
= control target key start
LH: loop header
LB: loop body
LE: loop exit
PB: predicated region body
PF: predicated region fallthrough
CT: control target
= control target key end

     0   :  { %8 = vsyncpa [#allocation4], 0  ;;  %s1377_s0 = inlined_call_operand.hbm [shape: f32[16,32], index: 0, kind: input, shape index: {}]   ;;  %s1378_s1 = inlined_call_operand.hbm [shape: bf16[288,128], index: 1, kind: input, shape index: {}]   ;;  %s1379_s2 = inlined_call_operand.hbm [shape: f32[8,128], index: 2, kind: input, shape index: {}]   ;;  %s1380_s3 = inlined_call_operand.vmem [shape: f32[16,2], index: 3, kind: output, shape index: {}]  }
   0x1   :  { %9 = vsyncpa [#allocation6], 0  ;;  %s1293_s12 = smov 0   ;;  %s1295_s13 = smov 0  }
   0x2   :  { %s1297_s14 = smov 0  }
   0x3 LB: > { %s154_s17 = sshll.u32 %s1378_s1, 4  ;;  %s885_s18 = sadd.s32 4294967295, %s1263_s14   ;;  %s1263_s14 = sphi %s1297_s14, %s15_s14   ;;  %s1259_s13 = sphi %s1295_s13, %s1385_s13   ;;  %s1255_s12 = sphi %s1293_s12, %s1384_s12   ;;  %s155_s17 = int_to_ptr.hbm [resolvable:$true] %s154_s17 }
   0x4   : > { %p886_p0 = scmp.ge.s32.totalorder %s1263_s14, 1  ;;  %p126_p1 = scmp.lt.s32.totalorder %s1263_s14, 4 }
   0x5   : > { %p1314_p2 = scmp.eq.s32.totalorder %s885_s18, 0  ;;  %s1265_s21 = smov [#allocation5]  }
   0x6   : > { %p1318_p3 = pnand %p886_p0, %p126_p1  ;;  %s156_s22 = sshll.u32 %s1265_s21, 4  ;;  %s157_s22 = int_to_ptr.vmem [resolvable:$true] %s156_s22 }
   0x7   : > { %s27_s24 = sadd.s32 1, %s1259_s13  ;;  %s1266_s25 = smov 64  }
   0x8   : > { %p1070_p4 = pneg %p1318_p3  ;;  %p29_p6 = scmp.ge.s32.totalorder %s27_s24, 3 }
   0x9   : > { %s1267_s26 = smov 4   ;;  %s140_s29 = sshll.u32 %s1377_s0, 4  ;;  %s141_s29 = int_to_ptr.hbm [resolvable:$true] %s140_s29 }
   0xa   : > { %p1326_p5 = pnand %p1314_p2, %p1070_p4  ;;  %s1387_s24 = smov (%p29_p6, %s27_s24), 0 }
   0xb   : > { %s1268_s30 = smov [#allocation3]   ;;  %s169_s7 = sshll.u32 %s1379_s2, 4  ;;  %s170_s7 = int_to_ptr.hbm [resolvable:$true] %s169_s7 }
   0xc   : > { %1076 = dma.hbm_to_vmem [thread:$0]  (!%p1326_p5), %s155_s17, 2304, %s157_s22, [#allocation6], %s1266_s25, %s1266_s25, %s1267_s26  }
   0xd   : > { %s142_s4 = sshll.u32 %s1268_s30, 4  ;;  %s1269_s8 = smov 128   ;;  %s143_s4 = int_to_ptr.vmem [resolvable:$true] %s142_s4 }
   0xe   : > { %s1270_s9 = smov 8   ;;  %s1271_s10 = smov [#allocation7]  }
   0xf   : > { %1073 = dma.hbm_to_vmem [thread:$0]  (!%p1326_p5), %s141_s29, 256, %s143_s4, [#allocation4], %s1269_s8, %s1269_s8, %s1270_s9  }
  0x10   : > { %s171_s11 = sshll.u32 %s1271_s10, 4  ;;  %184 = sbr.rel (%p1318_p3) target bundleno = 1132 (0x46c), region = 32  ;;  %s172_s11 = int_to_ptr.vmem [resolvable:$true] %s171_s11 }
  0x11   : > { %1079 = dma.hbm_to_vmem [thread:$0]  (!%p1326_p5), %s170_s7, 128, %s172_s11, [#allocation6]  }
  0x15   : > { %1246 = dma.done.wait (%p1314_p2), [#allocation4], 256  }
  0x16   : > { %1248 = vsyncadd (%p1314_p2), [#allocation4], 4294967040 }
  0x17   : > { %1250 = dma.done.wait (%p1314_p2), [#allocation6], 2432  }
  0x18   : > { %1252 = vsyncadd (%p1314_p2), [#allocation6], 4294964864  ;;  %p894_p7 = scmp.ne.s32.totalorder %s1255_s12, 0 }
  0x1a   : > { %225 = sbr.rel (%p894_p7) target bundleno = 196 (0xc4), region = 48 }
  0x1f   : > { %v1029_v0 = vld [vmem:[#allocation5 + $0x8] sm:$0xff]  ;;  %v1028_v1 = vld [vmem:[#allocation5] sm:$0xff]  ;;  %v231_v2 = vld [vmem:[#allocation3] sm:$0xff]  ;;  %vm252_vm0 = vcmask 261120   ;;  %v1272_v5 = vmov 0.0  }
  0x20   : > { %262 = vmatpush.bf16.msra.mxu0 %v1029_v0  ;;  %v232_v3 = vld [vmem:[#allocation3 + $0x8] sm:$0xff]  ;;  %230 = vst [vmem:[#allocation2] sm:$0xff] %v1272_v5  ;;  %v1118_v7 = vld [vmem:[#allocation7] ss:$0 sm:$0xff] }
  0x21   : > { %v233_v4 = vpack.c.bf16 %v232_v3, %v231_v2 }
  0x24   : > { %263 = vmatpush.bf16.msra.mxu0 %v1028_v1 }
  0x27   : > { %903 = vmatmul.msk.bf16.vlgmr.msra.gmra.mxu0 %vm252_vm0, %v233_v4  ;;  %v272_v26 = vld [vmem:[#allocation2] sm:$0x1]  ;;  %v282_v29 = vld [vmem:[#allocation2 + $0x1] sm:$0x1] }
  0xa4   : > { %v265_v6 = vpop.f32.mrf.mxu0 }
  0xa5   : > { %v266_v8 = vadd.f32 %v1118_v7, %v265_v6 }
  0xa7   : > { %v270_v10 = vmax.f32 %v266_v8, 0.0 }
  0xa9   : > { %v283_v13 = vmul.f32 %v270_v10, %v270_v10 }
  0xac   : > { %v267_v9 = vpop.f32.mrf.mxu0 }
  0xad   : > { %v268_v11 = vadd.f32 %v1118_v7, %v267_v9 }
  0xaf   : > { %v271_v12 = vmax.f32 %v268_v11, 0.0 }
  0xb1   : > { %v273_v14 = vadd.f32 %v271_v12, %v270_v10  ;;  %v284_v15 = vmul.f32 %v271_v12, %v271_v12 }
  0xb3   : > { %v274_v16 = vrot.slane %v273_v14, 4  ;;  %v285_v17 = vadd.f32 %v284_v15, %v283_v13 }
  0xb5   : > { %v275_v18 = vadd.f32 %v274_v16, %v273_v14  ;;  %v286_v19 = vrot.slane %v285_v17, 4 }
  0xb7   : > { %v276_v20 = vrot.slane %v275_v18, 2  ;;  %v287_v21 = vadd.f32 %v286_v19, %v285_v17 }
  0xb9   : > { %v277_v22 = vadd.f32 %v276_v20, %v275_v18  ;;  %v288_v23 = vrot.slane %v287_v21, 2 }
  0xbb   : > { %v278_v24 = vrot.slane %v277_v22, 1  ;;  %v289_v25 = vadd.f32 %v288_v23, %v287_v21 }
  0xbd   : > { %v279_v27 = vadd.f32 %v278_v24, %v277_v22  ;;  %v290_v28 = vrot.slane %v289_v25, 1 }
  0xbf   : > { %v280_v30 = vadd.f32 %v279_v27, %v272_v26  ;;  %v291_v31 = vadd.f32 %v290_v28, %v289_v25 }
  0xc1   : > { %281 = vst [vmem:[#allocation2] sm:$0x1] %v280_v30  ;;  %v292_v32 = vadd.f32 %v291_v31, %v282_v29 }
  0xc3   : > { %293 = vst [vmem:[#allocation2 + $0x1] sm:$0x1] %v292_v32 }
  0xc4 PF: > { %p904_p8 = scmp.ne.s32.totalorder %s1255_s12, 1 }
  0xc6   : > { %297 = sbr.rel (%p904_p8) target bundleno = 512 (0x200), region = 56 }
  0xcb   : > { %v1031_v33 = vld [vmem:[#allocation5 + $0x8] sm:$0xff]  ;;  %v1030_v34 = vld [vmem:[#allocation5] sm:$0xff]  ;;  %v327_v36 = vld [vmem:[#allocation3] sm:$0xff]  ;;  %vm348_vm1 = vcmask 261120  }
  0xcc   : > { %v1039_v35 = vld [vmem:[#allocation5 + $0x48] sm:$0xff]  ;;  %358 = vmatpush.bf16.msra.mxu0 %v1031_v33  ;;  %v328_v37 = vld [vmem:[#allocation3 + $0x8] sm:$0xff]  ;;  %v1038_v39 = vld [vmem:[#allocation5 + $0x40] sm:$0xff] }
  0xcd   : > { %v304_v38 = vld [vmem:[#allocation2] sm:$0x1]  ;;  %443 = vmatpush.bf16.msra.mxu1 %v1039_v35  ;;  %v306_v41 = vld [vmem:[#allocation2 + $0x1] sm:$0x1]  ;;  %v329_v43 = vpack.c.bf16 %v328_v37, %v327_v36  ;;  %v1037_v45 = vld [vmem:[#allocation5 + $0x38] sm:$0xff] }
  0xce   : > { %v305_v40 = vmul.f32 0.0625, %v304_v38  ;;  %v307_v42 = vmul.f32 0.0625, %v306_v41  ;;  %v302_v54 = vld [vmem:[#allocation7 + $0x1] sm:$0x1]  ;;  %v303_v59 = vld [vmem:[#allocation7 + $0x2] sm:$0x1] }
  0xcf   : > { %v1036_v61 = vld [vmem:[#allocation5 + $0x30] sm:$0xff]  ;;  %v1035_v62 = vld [vmem:[#allocation5 + $0x28] sm:$0xff]  ;;  %v1034_v63 = vld [vmem:[#allocation5 + $0x20] sm:$0xff] }
  0xd0   : > { %v308_v44 = vmul.f32 %v305_v40, %v305_v40  ;;  %359 = vmatpush.bf16.msra.mxu0 %v1030_v34  ;;  %v1033_v0 = vld [vmem:[#allocation5 + $0x18] sm:$0xff]  ;;  %v1032_v1 = vld [vmem:[#allocation5 + $0x10] sm:$0xff]  ;;  %v459_v36 = vld [vmem:[#allocation2 + $0x2] sm:$0x1] }
  0xd1   : > { %444 = vmatpush.bf16.msra.mxu1 %v1038_v39  ;;  %v1119_v2 = vld [vmem:[#allocation7] ss:$0 sm:$0xff]  ;;  %v1122_v17 = vld [vmem:[#allocation7 + $0x3] ss:$0 sm:$0xff]  ;;  %v469_v39 = vld [vmem:[#allocation2 + $0x3] sm:$0x1] }
  0xd2   : > { %v309_v46 = vsub.f32 %v307_v42, %v308_v44 }
  0xd3   : > { %913 = vmatmul.msk.bf16.vlgmr.msra.gmra.mxu0 %vm348_vm1, %v329_v43 }
  0xd4   : > { %v310_v47 = vmax.f32 %v309_v46, 0.0 }
  0xd5   : > { %445 = vmatpush.bf16.msra.mxu1 %v1037_v45 }
  0xd6   : > { %v311_v48 = vadd.f32 1e-05, %v310_v47 }
  0xd8   : > { %1123 = vrsqrt.f32 %v311_v48  ;;  %vm318_vm2 = vweird.f32 %v311_v48 }
  0xd9   : > { %446 = vmatpush.bf16.msra.mxu1 %v1036_v61 }
  0xdd   : > { %447 = vmatpush.bf16.msra.mxu1 %v1035_v62 }
  0xde   : > { %v1124_v49 = vpop.eup %1123 }
  0xdf   : > { %v313_v50 = vmul.f32 %v1124_v49, %v311_v48  ;;  %vm319_vm3 = vweird.f32 %v1124_v49 }
  0xe0   : > { %vm320_vm4 = vmor %vm318_vm2, %vm319_vm3 }
  0xe1   : > { %v314_v51 = vmul.f32 %v1124_v49, %v313_v50  ;;  %448 = vmatpush.bf16.msra.mxu1 %v1034_v63 }
  0xe3   : > { %v315_v52 = vmul.f32 0.5, %v314_v51 }
  0xe5   : > { %v316_v53 = vsub.f32 1.5, %v315_v52  ;;  %449 = vmatpush.bf16.msra.mxu1 %v1033_v0 }
  0xe7   : > { %v317_v55 = vmul.f32 %v1124_v49, %v316_v53 }
  0xe9   : > { %v321_v56 = vsel %vm320_vm4, %v1124_v49, %v317_v55  ;;  %450 = vmatpush.bf16.msra.mxu1 %v1032_v1 }
  0xea   : > { %v322_v57 = vmul.f32 %v321_v56, %v302_v54 }
  0xec   : > { %323 = vst [vmem:[#allocation2 + $0x4] sm:$0x1] %v322_v57  ;;  %v324_v58 = vmul.f32 %v322_v57, %v305_v40 }
  0xee   : > { %v325_v60 = vsub.f32 %v303_v59, %v324_v58 }
  0xf0   : > { %326 = vst [vmem:[#allocation2 + $0x5] sm:$0x1] %v325_v60 }
  0xf3   : > { %v1120_v6 = vld [vmem:[#allocation2 + $0x4] ss:$0 sm:$0xff] }
  0xf7   : > { %v1121_v11 = vld [vmem:[#allocation2 + $0x5] ss:$0 sm:$0xff] }
 0x150   : > { %v361_v3 = vpop.f32.mrf.mxu0 }
 0x151   : > { %v362_v4 = vadd.f32 %v1119_v2, %v361_v3 }
 0x153   : > { %v366_v5 = vmax.f32 %v362_v4, 0.0 }
 0x155   : > { %v370_v9 = vmul.f32 %v1120_v6, %v366_v5 }
 0x157   : > { %v374_v13 = vadd.f32 %v1121_v11, %v370_v9 }
 0x158   : > { %v363_v7 = vpop.f32.mrf.mxu0 }
 0x159   : > { %v364_v8 = vadd.f32 %v1119_v2, %v363_v7 }
 0x15b   : > { %v367_v10 = vmax.f32 %v364_v8, 0.0 }
 0x15d   : > { %v371_v12 = vmul.f32 %v1120_v6, %v367_v10 }
 0x15f   : > { %v375_v14 = vadd.f32 %v1121_v11, %v371_v12 }
 0x161   : > { %v376_v15 = vpack.c.bf16 %v375_v14, %v374_v13 }
 0x163   : > { %451 = vmatmul.bf16.vlgmr.msra.gmra.mxu1 %v376_v15 }
 0x1e0   : > { %v452_v16 = vpop.f32.mrf.mxu1 }
 0x1e1   : > { %v453_v18 = vadd.f32 %v1122_v17, %v452_v16 }
 0x1e3   : > { %v457_v20 = vmax.f32 %v453_v18, 0.0 }
 0x1e5   : > { %v470_v23 = vmul.f32 %v457_v20, %v457_v20 }
 0x1e8   : > { %v454_v19 = vpop.f32.mrf.mxu1 }
 0x1e9   : > { %v455_v21 = vadd.f32 %v1122_v17, %v454_v19 }
 0x1eb   : > { %v458_v22 = vmax.f32 %v455_v21, 0.0 }
 0x1ed   : > { %v460_v24 = vadd.f32 %v458_v22, %v457_v20  ;;  %v471_v25 = vmul.f32 %v458_v22, %v458_v22 }
 0x1ef   : > { %v461_v26 = vrot.slane %v460_v24, 4  ;;  %v472_v27 = vadd.f32 %v471_v25, %v470_v23 }
 0x1f1   : > { %v462_v28 = vadd.f32 %v461_v26, %v460_v24  ;;  %v473_v29 = vrot.slane %v472_v27, 4 }
 0x1f3   : > { %v463_v30 = vrot.slane %v462_v28, 2  ;;  %v474_v31 = vadd.f32 %v473_v29, %v472_v27 }
 0x1f5   : > { %v464_v32 = vadd.f32 %v463_v30, %v462_v28  ;;  %v475_v33 = vrot.slane %v474_v31, 2 }
 0x1f7   : > { %v465_v34 = vrot.slane %v464_v32, 1  ;;  %v476_v35 = vadd.f32 %v475_v33, %v474_v31 }
 0x1f9   : > { %v466_v37 = vadd.f32 %v465_v34, %v464_v32  ;;  %v477_v38 = vrot.slane %v476_v35, 1 }
 0x1fb   : > { %v467_v40 = vadd.f32 %v466_v37, %v459_v36  ;;  %v478_v41 = vadd.f32 %v477_v38, %v476_v35 }
 0x1fd   : > { %468 = vst [vmem:[#allocation2 + $0x2] sm:$0x1] %v467_v40  ;;  %v479_v42 = vadd.f32 %v478_v41, %v469_v39 }
 0x1ff   : > { %480 = vst [vmem:[#allocation2 + $0x3] sm:$0x1] %v479_v42 }
 0x200 PF: > { %p946_p9 = scmp.ne.s32.totalorder %s1255_s12, 2 }
 0x202   : > { %484 = sbr.rel (%p946_p9) target bundleno = 1132 (0x46c), region = 64 }
 0x207   : > { %v1041_v43 = vld [vmem:[#allocation5 + $0x8] sm:$0xff]  ;;  %v1040_v44 = vld [vmem:[#allocation5] sm:$0xff]  ;;  %v514_v45 = vld [vmem:[#allocation3] sm:$0xff]  ;;  %vm535_vm5 = vcmask 261120   ;;  %vm689_vm9 = vcmask 523264   ;;  %vm799_vm13 = vcmask 15360  }
 0x208   : > { %v1049_v46 = vld [vmem:[#allocation5 + $0x48] sm:$0xff]  ;;  %545 = vmatpush.bf16.msra.mxu0 %v1041_v43  ;;  %v515_v47 = vld [vmem:[#allocation3 + $0x8] sm:$0xff]  ;;  %v1048_v48 = vld [vmem:[#allocation5 + $0x40] sm:$0xff] }
 0x209   : > { %630 = vmatpush.bf16.msra.mxu1 %v1049_v46  ;;  %v516_v49 = vpack.c.bf16 %v515_v47, %v514_v45  ;;  %v1047_v50 = vld [vmem:[#allocation5 + $0x38] sm:$0xff]  ;;  %v1046_v51 = vld [vmem:[#allocation5 + $0x30] sm:$0xff]  ;;  %v1045_v52 = vld [vmem:[#allocation5 + $0x28] sm:$0xff] }
 0x20a   : > { %v1044_v53 = vld [vmem:[#allocation5 + $0x20] sm:$0xff]  ;;  %v1043_v54 = vld [vmem:[#allocation5 + $0x18] sm:$0xff]  ;;  %v1042_v55 = vld [vmem:[#allocation5 + $0x10] sm:$0xff] }
 0x20b   : > { %v491_v56 = vld [vmem:[#allocation2 + $0x2] sm:$0x1]  ;;  %v493_v58 = vld [vmem:[#allocation2 + $0x3] sm:$0x1]  ;;  %v1125_v0 = vld [vmem:[#allocation7] ss:$0 sm:$0xff] }
 0x20c   : > { %546 = vmatpush.bf16.msra.mxu0 %v1040_v44  ;;  %v492_v57 = vmul.f32 0.0625, %v491_v56  ;;  %v494_v59 = vmul.f32 0.0625, %v493_v58  ;;  %v1126_v6 = vld [vmem:[#allocation2 + $0x4] ss:$0 sm:$0xff]  ;;  %v1127_v13 = vld [vmem:[#allocation2 + $0x5] ss:$0 sm:$0xff] }
 0x20d   : > { %631 = vmatpush.bf16.msra.mxu1 %v1048_v48  ;;  %v489_v16 = vld [vmem:[#allocation7 + $0x4] sm:$0x1]  ;;  %v490_v23 = vld [vmem:[#allocation7 + $0x5] sm:$0x1]  ;;  %v1053_v26 = vld [vmem:[#allocation5 + $0x68] sm:$0xff] }
 0x20e   : > { %v495_v60 = vmul.f32 %v492_v57, %v492_v57  ;;  %697 = vmatpush.bf16.msra.mxu2 %v1053_v26  ;;  %v1052_v27 = vld [vmem:[#allocation5 + $0x60] sm:$0xff]  ;;  %v1051_v28 = vld [vmem:[#allocation5 + $0x58] sm:$0xff]  ;;  %v1050_v29 = vld [vmem:[#allocation5 + $0x50] sm:$0xff] }
 0x20f   : > { %955 = vmatmul.msk.bf16.vlgmr.msra.gmra.mxu0 %vm535_vm5, %v516_v49  ;;  %v1128_v30 = vld [vmem:[#allocation7 + $0x3] ss:$0 sm:$0xff]  ;;  %v1057_v44 = vld [vmem:[#allocation5 + $0x88] sm:$0xff]  ;;  %v1056_v45 = vld [vmem:[#allocation5 + $0x80] sm:$0xff] }
 0x210   : > { %v496_v61 = vsub.f32 %v494_v59, %v495_v60  ;;  %751 = vmatpush.bf16.msra.mxu3 %v1057_v44  ;;  %v1055_v46 = vld [vmem:[#allocation5 + $0x78] sm:$0xff]  ;;  %v1054_v47 = vld [vmem:[#allocation5 + $0x70] sm:$0xff] }
 0x211   : > { %632 = vmatpush.bf16.msra.mxu1 %v1047_v50  ;;  %v1131_v49 = vld [vmem:[#allocation7 + $0x6] ss:$0 sm:$0xff]  ;;  %v1132_v56 = vld [vmem:[#allocation7 + $0x7] ss:$0 sm:$0xff] }
 0x212   : > { %v497_v62 = vmax.f32 %v496_v61, 0.0  ;;  %698 = vmatpush.bf16.msra.mxu2 %v1052_v27 }
 0x214   : > { %v498_v63 = vadd.f32 1e-05, %v497_v62  ;;  %752 = vmatpush.bf16.msra.mxu3 %v1056_v45 }
 0x215   : > { %633 = vmatpush.bf16.msra.mxu1 %v1046_v51 }
 0x216   : > { %1133 = vrsqrt.f32 %v498_v63  ;;  %vm505_vm6 = vweird.f32 %v498_v63  ;;  %699 = vmatpush.bf16.msra.mxu2 %v1051_v28 }
 0x218   : > { %753 = vmatpush.bf16.msra.mxu3 %v1055_v46 }
 0x219   : > { %634 = vmatpush.bf16.msra.mxu1 %v1045_v52 }
 0x21a   : > { %700 = vmatpush.bf16.msra.mxu2 %v1050_v29 }
 0x21c   : > { %v1134_v3 = vpop.eup %1133  ;;  %754 = vmatpush.bf16.msra.mxu3 %v1054_v47 }
 0x21d   : > { %635 = vmatpush.bf16.msra.mxu1 %v1044_v53  ;;  %v500_v4 = vmul.f32 %v1134_v3, %v498_v63  ;;  %vm506_vm7 = vweird.f32 %v1134_v3 }
 0x21e   : > { %vm507_vm8 = vmor %vm505_vm6, %vm506_vm7 }
 0x21f   : > { %v501_v7 = vmul.f32 %v1134_v3, %v500_v4 }
 0x221   : > { %636 = vmatpush.bf16.msra.mxu1 %v1043_v54  ;;  %v502_v10 = vmul.f32 0.5, %v501_v7 }
 0x223   : > { %v503_v14 = vsub.f32 1.5, %v502_v10 }
 0x225   : > { %637 = vmatpush.bf16.msra.mxu1 %v1042_v55  ;;  %v504_v17 = vmul.f32 %v1134_v3, %v503_v14 }
 0x227   : > { %v508_v20 = vsel %vm507_vm8, %v1134_v3, %v504_v17 }
 0x228   : > { %v509_v21 = vmul.f32 %v508_v20, %v489_v16 }
 0x22a   : > { %510 = vst [vmem:[#allocation2 + $0x6] sm:$0x1] %v509_v21  ;;  %v511_v24 = vmul.f32 %v509_v21, %v492_v57 }
 0x22c   : > { %v512_v25 = vsub.f32 %v490_v23, %v511_v24 }
 0x22e   : > { %513 = vst [vmem:[#allocation2 + $0x7] sm:$0x1] %v512_v25 }
 0x231   : > { %v1129_v34 = vld [vmem:[#allocation2 + $0x6] ss:$0 sm:$0xff] }
 0x235   : > { %v1130_v38 = vld [vmem:[#allocation2 + $0x7] ss:$0 sm:$0xff] }
 0x28c   : > { %v548_v1 = vpop.f32.mrf.mxu0 }
 0x28d   : > { %v549_v2 = vadd.f32 %v1125_v0, %v548_v1 }
 0x28f   : > { %v553_v5 = vmax.f32 %v549_v2, 0.0 }
 0x291   : > { %v557_v11 = vmul.f32 %v1126_v6, %v553_v5 }
 0x293   : > { %v561_v18 = vadd.f32 %v1127_v13, %v557_v11 }
 0x294   : > { %v550_v8 = vpop.f32.mrf.mxu0 }
 0x295   : > { %v551_v9 = vadd.f32 %v1125_v0, %v550_v8 }
 0x297   : > { %v554_v12 = vmax.f32 %v551_v9, 0.0 }
 0x299   : > { %v558_v15 = vmul.f32 %v1126_v6, %v554_v12 }
 0x29b   : > { %v562_v19 = vadd.f32 %v1127_v13, %v558_v15 }
 0x29d   : > { %v563_v22 = vpack.c.bf16 %v562_v19, %v561_v18 }
 0x29f   : > { %638 = vmatmul.bf16.vlgmr.msra.gmra.mxu1 %v563_v22 }
 0x31c   : > { %v639_v31 = vpop.f32.mrf.mxu1 }
 0x31d   : > { %v640_v32 = vadd.f32 %v1128_v30, %v639_v31 }
 0x31f   : > { %v644_v33 = vmax.f32 %v640_v32, 0.0 }
 0x321   : > { %v648_v37 = vmul.f32 %v1129_v34, %v644_v33 }
 0x323   : > { %v652_v41 = vadd.f32 %v1130_v38, %v648_v37 }
 0x324   : > { %v641_v35 = vpop.f32.mrf.mxu1 }
 0x325   : > { %v642_v36 = vadd.f32 %v1128_v30, %v641_v35 }
 0x327   : > { %v645_v39 = vmax.f32 %v642_v36, 0.0 }
 0x329   : > { %v649_v40 = vmul.f32 %v1129_v34, %v645_v39 }
 0x32b   : > { %v653_v42 = vadd.f32 %v1130_v38, %v649_v40 }
 0x32d   : > { %v654_v43 = vpack.c.bf16 %v653_v42, %v652_v41 }
 0x32f   : > { %1004 = vmatmul.msk.bf16.vlgmr.msra.gmra.mxu2 %vm689_vm9, %v654_v43 }
 0x3b2   : > { %v702_v48 = vpop.f32.mrf.mxu2 }
 0x3b3   : > { %v703_v50 = vadd.f32 %v1131_v49, %v702_v48 }
 0x3b5   : > { %v707_v53 = vmax.f32 %v703_v50, 0.0 }
 0x3ba   : > { %v704_v51 = vpop.f32.mrf.mxu2 }
 0x3bb   : > { %v705_v52 = vadd.f32 %v1131_v49, %v704_v51 }
 0x3bd   : > { %v708_v54 = vmax.f32 %v705_v52, 0.0 }
 0x3bf   : > { %v709_v55 = vpack.c.bf16 %v708_v54, %v707_v53 }
 0x3c1   : > { %1021 = vmatmul.msk.bf16.vlgmr.msra.gmra.mxu3 %vm689_vm9, %v709_v55 }
 0x444   : > { %v756_v57 = vpop.f32.mrf.mxu3 }
 0x445   : > { %v757_v58 = vadd.f32 %v1132_v56, %v756_v57 }
 0x447   : > { %v1022_v59 = vmul.f32 -1.442695, %v757_v58 }
 0x449   : > { %1135 = vpow2.f32 %v1022_v59 }
 0x44c   : > { %v758_v60 = vpop.f32.mrf.mxu3 }
 0x44d   : > { %v759_v61 = vadd.f32 %v1132_v56, %v758_v60 }
 0x44f   : > { %v1136_v62 = vpop.eup %1135  ;;  %v1023_v63 = vmul.f32 -1.442695, %v759_v61 }
 0x450   : > { %v767_v0 = vadd.f32 1.0, %v1136_v62 }
 0x451   : > { %1137 = vpow2.f32 %v1023_v63 }
 0x452   : > { %1139 = vrcp.f32 %v767_v0  ;;  %v780_v6 = vand.u32 2147483648, %v767_v0  ;;  %v778_v8 = vand.u32 2147483647, %v767_v0  ;;  %vm774_vm11 = vweird.f32 %v767_v0 }
 0x454   : > { %v781_v11 = vor.u32 1.1754944e-38, %v780_v6  ;;  %vm779_vm14 = vcmp.eq.f32.partialorder %v778_v8, 8.507059e+37 }
 0x457   : > { %v1138_v1 = vpop.eup %1137 }
 0x458   : > { %v1140_v2 = vpop.eup %1139  ;;  %v768_v3 = vadd.f32 1.0, %v1138_v1 }
 0x459   : > { %v770_v4 = vmul.f32 %v1140_v2, %v767_v0  ;;  %vm775_vm10 = vweird.f32 %v1140_v2 }
 0x45a   : > { %1141 = vrcp.f32 %v768_v3  ;;  %vm776_vm12 = vmor %vm774_vm11, %vm775_vm10  ;;  %v795_v16 = vand.u32 2147483648, %v768_v3  ;;  %v793_v18 = vand.u32 2147483647, %v768_v3  ;;  %vm789_vm0 = vweird.f32 %v768_v3 }
 0x45b   : > { %v771_v5 = vsub.f32 1.0, %v770_v4 }
 0x45c   : > { %v796_v20 = vor.u32 1.1754944e-38, %v795_v16  ;;  %vm794_vm2 = vcmp.eq.f32.partialorder %v793_v18, 8.507059e+37 }
 0x45d   : > { %v772_v7 = vmul.f32 %v1140_v2, %v771_v5 }
 0x45f   : > { %v773_v9 = vadd.f32 %v1140_v2, %v772_v7 }
 0x460   : > { %v1142_v10 = vpop.eup %1141 }
 0x461   : > { %v777_v12 = vsel %vm776_vm12, %v1140_v2, %v773_v9  ;;  %v785_v13 = vmul.f32 %v1142_v10, %v768_v3  ;;  %vm790_vm15 = vweird.f32 %v1142_v10 }
 0x462   : > { %v782_v14 = vsel %vm779_vm14, %v781_v11, %v777_v12  ;;  %vm791_vm1 = vmor %vm789_vm0, %vm790_vm15 }
 0x463   : > { %800 = vst.msk [vmem:[%s1380_s3] sm:$0xff] %vm799_vm13, %v782_v14  ;;  %v786_v15 = vsub.f32 1.0, %v785_v13 }
 0x465   : > { %v787_v17 = vmul.f32 %v1142_v10, %v786_v15 }
 0x467   : > { %v788_v19 = vadd.f32 %v1142_v10, %v787_v17 }
 0x469   : > { %v792_v21 = vsel %vm791_vm1, %v1142_v10, %v788_v19 }
 0x46a   : > { %v797_v22 = vsel %vm794_vm2, %v796_v20, %v792_v21 }
 0x46b   : > { %801 = vst.msk [vmem:[%s1380_s3 + $0x8] sm:$0xff] %vm799_vm13, %v797_v22 }
 0x46c PF: > { %s15_s14 = sadd.s32 1, %s1263_s14   ;;  %s1384_s12 = smov %s1259_s13 }
 0x46d   : > { %p12_p10 = scmp.ge.s32.totalorder %s15_s14, 5   ;;  %s1385_s13 = smov %s1387_s24 }
 0x46f   :  { %14 = sbr.rel (!%p12_p10) target bundleno = 3 (0x3), region = 97 }
 0x474   :  { %824 = vsyncpa [#allocation4], 1 }
 0x475   :  { %826 = vsyncpa [#allocation4 + $0x1], 1 }
 0x476   :  { %827 = vsyncpa [#allocation6], 1 }

</bundles_post_ra>
